<compile_context>
chip_gen: v5e
topology: v5e:2x2
jax: 0.10.0
libtpu: 0.0.40
codegen_flags: <defaults>
</compile_context>

<pallas_src>
import functools

import jax
import jax.numpy as jnp
from jax.experimental import pallas as pl
from jax.experimental.pallas import tpu as pltpu


def _fused_kernel(score_ref, feats_ref, w_ref, b_ref, labels_ref, mask_ref,
                  attw_ref, scores_ref, partial_ref, *, sent_num):
    i = pl.program_id(0)
    ts, npad = labels_ref.shape

    # ---- attention pool FIRST (cheap VPU multiply + 8-sublane reduce) ----------
    score = score_ref[...]                                  # (TS, A)   f32
    feats = feats_ref[...].astype(jnp.float32)              # (TS, A, D) bf16 -> f32
    fused = jnp.sum(score[:, :, None] * feats, axis=1)      # (TS, D)   f32
    # TODO(synk): nn.Dropout is treated as eval-mode identity; training-mode dropout
    # would use pltpu.prng_seed / pltpu.prng_random_bits on `fused`.

    # ---- single lane-dense MXU matmul (bf16 x bf16 -> f32 acc) -----------------
    logits = jnp.dot(fused.astype(jnp.bfloat16), w_ref[...],
                     preferred_element_type=jnp.float32) + b_ref[...]   # (TS, Npad)
    scores_ref[...] = logits

    # ---- masked, weighted BCE-with-logits partial sums -------------------------
    # row validity (S % block_s padding) + selected-row mask
    row_ids = i * ts + jax.lax.broadcasted_iota(jnp.int32, (ts, 1), 0)
    keep = jnp.logical_and(mask_ref[...] > 0.5, row_ids < sent_num)     # (TS, 1)

    x = logits
    z = labels_ref[...]
    # numerically stable: l = max(x,0) - x*z + log(1 + exp(-|x|))
    per_elem = jnp.maximum(x, 0.0) - x * z + jnp.log1p(jnp.exp(-jnp.abs(x)))
    per_elem = jnp.where(keep, per_elem * attw_ref[...], 0.0)           # (TS, Npad)

    # fold TS rows into 8 sublanes (VPU adds only); cross-lane reduce happens
    # outside the kernel on the tiny (num_tiles, 8, Npad) partials array.
    partial_ref[...] = jnp.sum(per_elem.reshape(ts // 8, 8, npad), axis=0)[None]


def attribute_reconstruct_loss(attribute_feats, total_ann_score, att_labels,
                               select_ixs, att_weights, w_t, b, *,
                               block_s=256, vmem_limit_bytes=None):
    """Fused forward of AttributeReconstructLoss.

    Returns (att_scores (S, N) f32, att_loss scalar f32).
    Notes:
      * K == 0 (empty select_ixs) returns loss = 0.0 (PyTorch would NaN).
      * duplicate indices in select_ixs are counted once (mask-based selection).
    """
    S, A, D = attribute_feats.shape
    N = w_t.shape[1]
    K = int(select_ixs.shape[0])
    NPAD = ((max(N, 1) + 127) // 128) * 128          # lane-dense attribute dim

    # block_s: multiple of 8, no larger than (rounded-up) S.
    block_s = max(8, min(((block_s + 7) // 8) * 8, ((S + 7) // 8) * 8))
    num_tiles = pl.cdiv(S, block_s)

    # ---- tiny host-side prep (casts / zero-pads; cheap at trace time) ----------
    feats_bf16 = attribute_feats.astype(jnp.bfloat16)                 # dominant HBM operand
    w_pad = jnp.zeros((D, NPAD), jnp.bfloat16).at[:, :N].set(w_t.astype(jnp.bfloat16))
    b_pad = jnp.zeros((1, NPAD), jnp.float32).at[0, :N].set(b.astype(jnp.float32))
    labels_pad = jnp.zeros((S, NPAD), jnp.float32).at[:, :N].set(att_labels.astype(jnp.float32))
    attw_pad = jnp.zeros((1, NPAD), jnp.float32).at[0, :N].set(att_weights.astype(jnp.float32))

    sel_mask = jnp.zeros((S, 1), jnp.float32)
    if K > 0:                                       # trace-time branch
        sel_mask = sel_mask.at[select_ixs, 0].set(1.0)
    inv_kn = 0.0 if K == 0 else 1.0 / float(K * N)  # normalize with the TRUE N

    kernel = functools.partial(_fused_kernel, sent_num=S)

    scores_pad, partials = pl.pallas_call(
        kernel,
        out_shape=(jax.ShapeDtypeStruct((S, NPAD), jnp.float32),
                   jax.ShapeDtypeStruct((num_tiles, 8, NPAD), jnp.float32)),
        grid_spec=pltpu.PrefetchScalarGridSpec(
            num_scalar_prefetch=0,
            grid=(num_tiles,),
            in_specs=[
                pl.BlockSpec((block_s, A), lambda i: (i, 0)),          # total_ann_score
                pl.BlockSpec((block_s, A, D), lambda i: (i, 0, 0)),    # feats (bf16, 3-D)
                pl.BlockSpec((D, NPAD), lambda i: (0, 0)),             # W^T (bf16, padded)
                pl.BlockSpec((1, NPAD), lambda i: (0, 0)),             # bias (padded)
                pl.BlockSpec((block_s, NPAD), lambda i: (i, 0)),       # labels (padded)
                pl.BlockSpec((block_s, 1), lambda i: (i, 0)),          # select mask
                pl.BlockSpec((1, NPAD), lambda i: (0, 0)),             # weights (padded)
            ],
            out_specs=(
                pl.BlockSpec((block_s, NPAD), lambda i: (i, 0)),       # att_scores (padded)
                pl.BlockSpec((1, 8, NPAD), lambda i: (i, 0, 0)),       # per-tile loss partials
            ),
        ),
        # grid axis is fully independent per tile (no in-kernel accumulator)
        # -> "parallel" lets v7x shard tiles across both TensorCores.
        compiler_params=pltpu.CompilerParams(
            dimension_semantics=("parallel",),
            vmem_limit_bytes=vmem_limit_bytes),
    )(total_ann_score.astype(jnp.float32), feats_bf16, w_pad, b_pad,
      labels_pad, sel_mask, attw_pad)

    att_scores = scores_pad[:, :N]
    att_loss = jnp.sum(partials) * jnp.float32(inv_kn)
    return att_scores, att_loss


if __name__ == "__main__":
    key = jax.random.PRNGKey(0)
    sent_num, ann_num = 8, 8
    fc7_dim, pool5_dim = 24, 8
    feat_dim = fc7_dim + pool5_dim        # 32  (stands in for the real 512)
    num_atts = 16

    k1, k2, k3, k4, k5, k6 = jax.random.split(key, 6)
    attribute_feats = jax.random.normal(k1, (sent_num, ann_num, feat_dim),
                                        dtype=jnp.float32)
    total_ann_score = jax.nn.softmax(
        jax.random.normal(k2, (sent_num, ann_num), dtype=jnp.float32), axis=-1)
    att_labels = (jax.random.uniform(k3, (sent_num, num_atts)) > 0.5
                  ).astype(jnp.float32)
    att_weights = jax.random.uniform(k4, (num_atts,), minval=0.5, maxval=1.5
                                     ).astype(jnp.float32)
    select_ixs = jnp.array([0, 2, 5], dtype=jnp.int32)

    # deterministic parameters of att_fc = Linear(fc7_dim + pool5_dim, num_atts)
    w = jax.random.normal(k5, (num_atts, feat_dim), dtype=jnp.float32) \
        * (1.0 / jnp.sqrt(feat_dim))
    b = jax.random.normal(k6, (num_atts,), dtype=jnp.float32) * 0.01
    w_t = w.T                              # (feat_dim, num_atts)

    att_scores, att_loss = attribute_reconstruct_loss(
        attribute_feats, total_ann_score, att_labels,
        select_ixs, att_weights, w_t, b)
    jax.block_until_ready((att_scores, att_loss))

    # pure-JAX reference with the same bf16 feats/weight precision as the kernel
    feats_bf = attribute_feats.astype(jnp.bfloat16).astype(jnp.float32)
    w_bf = w_t.astype(jnp.bfloat16).astype(jnp.float32)
    fuse = jnp.einsum('sa,sad->sd', total_ann_score, feats_bf)
    fuse_bf = fuse.astype(jnp.bfloat16).astype(jnp.float32)
    ref_scores = fuse_bf @ w_bf + b
    xs = ref_scores[select_ixs]
    zs = att_labels[select_ixs]
    per = jnp.maximum(xs, 0.0) - xs * zs + jnp.log1p(jnp.exp(-jnp.abs(xs)))
    ref_loss = jnp.mean(per * att_weights[None, :])

    assert att_scores.shape == (sent_num, num_atts)
    assert jnp.allclose(att_scores, ref_scores, atol=2e-3, rtol=2e-3)
    assert jnp.allclose(att_loss, ref_loss, atol=2e-3, rtol=2e-3)
    print("KERNEL_OK")
</pallas_src>

<mosaic_0001>
module attributes {stable_mosaic.version = 11 : i64} {
  func.func @_fused_kernel(%arg0: i32, %arg1: memref<8x8xf32, #tpu.memory_space<vmem>>, %arg2: memref<8x8x32xbf16, #tpu.memory_space<vmem>>, %arg3: memref<32x128xbf16, #tpu.memory_space<vmem>>, %arg4: memref<1x128xf32, #tpu.memory_space<vmem>>, %arg5: memref<8x128xf32, #tpu.memory_space<vmem>>, %arg6: memref<8x1xf32, #tpu.memory_space<vmem>>, %arg7: memref<1x128xf32, #tpu.memory_space<vmem>>, %arg8: memref<8x128xf32, #tpu.memory_space<vmem>>, %arg9: memref<1x8x128xf32, #tpu.memory_space<vmem>>) attributes {dimension_semantics = [#tpu.dimension_semantics<parallel>], iteration_bounds = array<i64: 1>, scalar_prefetch = 0 : i64, scratch_operands = 0 : i64, tpu.core_type = #tpu.core_type<tc>, window_params = [{transform_indices = @transform_0, window_bounds = array<i64: 8, 8>}, {transform_indices = @transform_1, window_bounds = array<i64: 8, 8, 32>}, {pipeline_mode = #tpu.pipeline_mode<synchronous>, transform_indices = @transform_2, window_bounds = array<i64: 32, 128>}, {pipeline_mode = #tpu.pipeline_mode<synchronous>, transform_indices = @transform_3, window_bounds = array<i64: 1, 128>}, {transform_indices = @transform_4, window_bounds = array<i64: 8, 128>}, {transform_indices = @transform_5, window_bounds = array<i64: 8, 1>}, {pipeline_mode = #tpu.pipeline_mode<synchronous>, transform_indices = @transform_6, window_bounds = array<i64: 1, 128>}, {transform_indices = @transform_7, window_bounds = array<i64: 8, 128>}, {transform_indices = @transform_8, window_bounds = array<i64: 1, 8, 128>}]} {
    %c0 = arith.constant 0 : index
    %c0_0 = arith.constant 0 : index
    %0 = vector.load %arg1[%c0, %c0_0] : memref<8x8xf32, #tpu.memory_space<vmem>>, vector<8x8xf32>
    %c0_1 = arith.constant 0 : index
    %c0_2 = arith.constant 0 : index
    %c0_3 = arith.constant 0 : index
    %1 = vector.load %arg2[%c0_1, %c0_2, %c0_3] : memref<8x8x32xbf16, #tpu.memory_space<vmem>>, vector<8x8x32xbf16>
    %2 = arith.extf %1 : vector<8x8x32xbf16> to vector<8x8x32xf32>
    %3 = vector.shape_cast %0 : vector<8x8xf32> to vector<8x8x1xf32>
    %4 = vector.broadcast %3 : vector<8x8x1xf32> to vector<8x8x32xf32>
    %5 = arith.mulf %4, %2 : vector<8x8x32xf32>
    %cst = arith.constant dense<0.000000e+00> : vector<8x32xf32>
    %6 = vector.multi_reduction <add>, %5, %cst [1] : vector<8x8x32xf32> to vector<8x32xf32>
    %7 = arith.truncf %6 : vector<8x32xf32> to vector<8x32xbf16>
    %c0_4 = arith.constant 0 : index
    %c0_5 = arith.constant 0 : index
    %8 = vector.load %arg3[%c0_4, %c0_5] : memref<32x128xbf16, #tpu.memory_space<vmem>>, vector<32x128xbf16>
    %cst_6 = arith.constant dense<0.000000e+00> : vector<8x128xf32>
    %9 = tpu.matmul %7, %8, %cst_6 {dimension_numbers = #tpu.dot_dimension_numbers<[1], [0], [0], [1], [0, 0, 1, 1], [], []>} : vector<8x32xbf16>, vector<32x128xbf16>, vector<8x128xf32> -> vector<8x128xf32>
    %c0_7 = arith.constant 0 : index
    %c0_8 = arith.constant 0 : index
    %10 = vector.load %arg4[%c0_7, %c0_8] : memref<1x128xf32, #tpu.memory_space<vmem>>, vector<1x128xf32>
    %11 = vector.broadcast %10 : vector<1x128xf32> to vector<8x128xf32>
    %12 = arith.addf %9, %11 : vector<8x128xf32>
    %c0_9 = arith.constant 0 : index
    %c0_10 = arith.constant 0 : index
    %13 = vector.load %arg8[%c0_9, %c0_10] : memref<8x128xf32, #tpu.memory_space<vmem>>, vector<8x128xf32>
    tpu.vector_store %arg8[%c0_9, %c0_10], %12 {strides = array<i32>} : memref<8x128xf32, #tpu.memory_space<vmem>>, vector<8x128xf32>,
    %c8_i32 = arith.constant 8 : i32
    %14 = arith.muli %arg0, %c8_i32 : i32
    %15 = tpu.iota {dimensions = array<i32: 0>} : vector<8x1xi32>
    %16 = vector.broadcast %14 : i32 to vector<8x1xi32>
    %17 = arith.addi %16, %15 : vector<8x1xi32>
    %c0_11 = arith.constant 0 : index
    %c0_12 = arith.constant 0 : index
    %18 = vector.load %arg6[%c0_11, %c0_12] : memref<8x1xf32, #tpu.memory_space<vmem>>, vector<8x1xf32>
    %cst_13 = arith.constant 5.000000e-01 : f32
    %19 = vector.broadcast %cst_13 : f32 to vector<8x1xf32>
    %20 = arith.cmpf ogt, %18, %19 : vector<8x1xf32>
    %c8_i32_14 = arith.constant 8 : i32
    %21 = vector.broadcast %c8_i32_14 : i32 to vector<8x1xi32>
    %22 = arith.cmpi slt, %17, %21 : vector<8x1xi32>
    %23 = arith.andi %20, %22 : vector<8x1xi1>
    %c0_15 = arith.constant 0 : index
    %c0_16 = arith.constant 0 : index
    %24 = vector.load %arg5[%c0_15, %c0_16] : memref<8x128xf32, #tpu.memory_space<vmem>>, vector<8x128xf32>
    %cst_17 = arith.constant 0.000000e+00 : f32
    %25 = vector.broadcast %cst_17 : f32 to vector<8x128xf32>
    %26 = arith.maximumf %12, %25 : vector<8x128xf32>
    %27 = arith.mulf %12, %24 : vector<8x128xf32>
    %28 = arith.subf %26, %27 : vector<8x128xf32>
    %29 = math.absf %12 : vector<8x128xf32>
    %cst_18 = arith.constant 0.000000e+00 : f32
    %30 = vector.broadcast %cst_18 : f32 to vector<8x128xf32>
    %31 = arith.subf %30, %29 : vector<8x128xf32>
    %32 = math.exp %31 : vector<8x128xf32>
    %33 = math.log1p %32 : vector<8x128xf32>
    %34 = arith.addf %28, %33 : vector<8x128xf32>
    %c0_19 = arith.constant 0 : index
    %c0_20 = arith.constant 0 : index
    %35 = vector.load %arg7[%c0_19, %c0_20] : memref<1x128xf32, #tpu.memory_space<vmem>>, vector<1x128xf32>
    %36 = vector.broadcast %35 : vector<1x128xf32> to vector<8x128xf32>
    %37 = arith.mulf %34, %36 : vector<8x128xf32>
    %cst_21 = arith.constant 0.000000e+00 : f32
    %38 = vector.shape_cast %23 : vector<8x1xi1> to vector<8x1xi1>
    %39 = vector.broadcast %38 : vector<8x1xi1> to vector<8x128xi1>
    %40 = vector.broadcast %cst_21 : f32 to vector<8x128xf32>
    %41 = arith.select %39, %37, %40 : vector<8x128xi1>, vector<8x128xf32>
    %42 = vector.shape_cast %41 : vector<8x128xf32> to vector<1x8x128xf32>
    %cst_22 = arith.constant dense<0.000000e+00> : vector<8x128xf32>
    %43 = vector.multi_reduction <add>, %42, %cst_22 [0] : vector<1x8x128xf32> to vector<8x128xf32>
    %44 = vector.shape_cast %43 : vector<8x128xf32> to vector<1x8x128xf32>
    %c0_23 = arith.constant 0 : index
    %c0_24 = arith.constant 0 : index
    %c0_25 = arith.constant 0 : index
    %45 = vector.load %arg9[%c0_23, %c0_24, %c0_25] : memref<1x8x128xf32, #tpu.memory_space<vmem>>, vector<1x8x128xf32>
    tpu.vector_store %arg9[%c0_23, %c0_24, %c0_25], %44 {strides = array<i32>} : memref<1x8x128xf32, #tpu.memory_space<vmem>>, vector<1x8x128xf32>,
    return
  }
  func.func @transform_0(%arg0: i32) -> (i32, i32) {
    %c0_i32 = arith.constant 0 : i32
    %c0_i32_0 = arith.constant 0 : i32
    return %arg0, %c0_i32 : i32, i32
  }
  func.func @transform_1(%arg0: i32) -> (i32, i32, i32) {
    %c0_i32 = arith.constant 0 : i32
    %c0_i32_0 = arith.constant 0 : i32
    %c0_i32_1 = arith.constant 0 : i32
    return %arg0, %c0_i32, %c0_i32_0 : i32, i32, i32
  }
  func.func @transform_2(%arg0: i32) -> (i32, i32) {
    %c0_i32 = arith.constant 0 : i32
    %c0_i32_0 = arith.constant 0 : i32
    %c0_i32_1 = arith.constant 0 : i32
    return %c0_i32, %c0_i32_0 : i32, i32
  }
  func.func @transform_3(%arg0: i32) -> (i32, i32) {
    %c0_i32 = arith.constant 0 : i32
    %c0_i32_0 = arith.constant 0 : i32
    %c0_i32_1 = arith.constant 0 : i32
    return %c0_i32, %c0_i32_0 : i32, i32
  }
  func.func @transform_4(%arg0: i32) -> (i32, i32) {
    %c0_i32 = arith.constant 0 : i32
    %c0_i32_0 = arith.constant 0 : i32
    return %arg0, %c0_i32 : i32, i32
  }
  func.func @transform_5(%arg0: i32) -> (i32, i32) {
    %c0_i32 = arith.constant 0 : i32
    %c0_i32_0 = arith.constant 0 : i32
    return %arg0, %c0_i32 : i32, i32
  }
  func.func @transform_6(%arg0: i32) -> (i32, i32) {
    %c0_i32 = arith.constant 0 : i32
    %c0_i32_0 = arith.constant 0 : i32
    %c0_i32_1 = arith.constant 0 : i32
    return %c0_i32, %c0_i32_0 : i32, i32
  }
  func.func @transform_7(%arg0: i32) -> (i32, i32) {
    %c0_i32 = arith.constant 0 : i32
    %c0_i32_0 = arith.constant 0 : i32
    return %arg0, %c0_i32 : i32, i32
  }
  func.func @transform_8(%arg0: i32) -> (i32, i32, i32) {
    %c0_i32 = arith.constant 0 : i32
    %c0_i32_0 = arith.constant 0 : i32
    %c0_i32_1 = arith.constant 0 : i32
    return %arg0, %c0_i32, %c0_i32_0 : i32, i32, i32
  }
}

</mosaic_0001>

<bundles_post_ra>
// kernel: tpu_custom_call.1
= control target key start
LH: loop header
LB: loop body
LE: loop exit
PB: predicated region body
PF: predicated region fallthrough
CT: control target
= control target key end

     0   :  { %14 = vsyncpa [#allocation3], 0  ;;  %s630_s0 = inlined_call_operand.vmem [shape: f32[8,8], index: 0, kind: input, shape index: {}]   ;;  %s631_s1 = inlined_call_operand.hbm [shape: bf16[8,8,32], index: 1, kind: input, shape index: {}]   ;;  %s632_s2 = inlined_call_operand.hbm [shape: bf16[32,128], index: 2, kind: input, shape index: {}]   ;;  %s633_s3 = inlined_call_operand.vmem [shape: f32[1,128], index: 3, kind: input, shape index: {}]   ;;  %s634_s4 = inlined_call_operand.hbm [shape: f32[8,128], index: 4, kind: input, shape index: {}]   ;;  %s635_s5 = inlined_call_operand.vmem [shape: f32[8,1], index: 5, kind: input, shape index: {}]   ;;  %s636_s6 = inlined_call_operand.vmem [shape: f32[1,128], index: 6, kind: input, shape index: {}]   ;;  %s637_s7 = inlined_call_operand.hbm [shape: f32[8,128], index: 7, kind: output, shape index: {0}]   ;;  %s638_s8 = inlined_call_operand.hbm [shape: f32[1,8,128], index: 8, kind: output, shape index: {1}]  }
   0x1   :  { %15 = vsyncpa [#allocation6], 0 }
   0x2   :  { %16 = vsyncpa [#allocation4], 0 }
   0x3   :  { %17 = vsyncpa [#allocation10], 0  ;;  %s37_s29 = sshll.u32 %s632_s2, 4  ;;  %s541_s30 = smov [#allocation5]   ;;  %s38_s29 = int_to_ptr.hbm [resolvable:$true] %s37_s29 }
   0x4   :  { %s39_s9 = sshll.u32 %s541_s30, 4  ;;  %s24_s12 = sshll.u32 %s631_s1, 4  ;;  %s40_s9 = int_to_ptr.vmem [resolvable:$true] %s39_s9  ;;  %s25_s12 = int_to_ptr.hbm [resolvable:$true] %s24_s12 }
   0x5   :  { %s542_s13 = smov 64   ;;  %s543_s14 = smov 4  }
   0x6   :  { %45 = dma.hbm_to_vmem [thread:$0]  %s38_s29, 256, %s40_s9, [#allocation6], %s542_s13, %s542_s13, %s543_s14  }
   0x7   :  { %s544_s15 = smov [#allocation2]   ;;  %s53_s19 = sshll.u32 %s634_s4, 4  ;;  %s54_s19 = int_to_ptr.hbm [resolvable:$true] %s53_s19 }
   0x8   :  { %s26_s16 = sshll.u32 %s544_s15, 4  ;;  %s545_s2 = smov [#allocation7]   ;;  %s27_s16 = int_to_ptr.vmem [resolvable:$true] %s26_s16 }
   0x9   :  { %32 = dma.hbm_to_vmem [thread:$0]  %s25_s12, 512, %s27_s16, [#allocation3], %s542_s13, %s542_s13, %s543_s14  }
   0xa   :  { %s55_s20 = sshll.u32 %s545_s2, 4  ;;  %s56_s20 = int_to_ptr.vmem [resolvable:$true] %s55_s20 }
   0xb   :  { %58 = dma.hbm_to_vmem [thread:$0]  %s54_s19, 128, %s56_s20, [#allocation6]  }
   0xc   :  { %533 = dma.done.wait [#allocation3], 512  }
   0xd   :  { %534 = vsyncadd [#allocation3], 4294966784 }
   0xe   :  { %535 = dma.done.wait [#allocation6], 384  }
   0xf   :  { %536 = vsyncadd [#allocation6], 4294966912  ;;  %v94_v0 = vlaneseq  ;;  %v76_v2 = vld [vmem:[%s630_s0] sm:$0xff]  ;;  %v392_v12 = vld [vmem:[#allocation2 + $0x10] sm:$0xff]   ;;  %vm157_vm0 = vcmask 261120   ;;  %v546_v50 = vmov 0  }
  0x10   :  { %v107_v3 = vperm.slane %v76_v2, 2  ;;  %v93_v4 = vperm.slane %v76_v2, 0  ;;  %v121_v5 = vperm.slane %v76_v2, 4  ;;  %v114_v6 = vperm.slane %v76_v2, 3  ;;  %v391_v15 = vld [vmem:[#allocation2 + $0x8] sm:$0xff]   ;;  %v376_v16 = vld [vmem:[#allocation2] sm:$0xff]  }
  0x11   :  { %v95_v1 = vshrl.u32 %v94_v0, 7  ;;  %v100_v7 = vperm.slane %v76_v2, 1  ;;  %v128_v8 = vperm.slane %v76_v2, 5  ;;  %v142_v9 = vperm.slane %v76_v2, 7  ;;  %v374_v23 = vld [vmem:[#allocation5 + $0x8] sm:$0xff]  ;;  %v373_v30 = vld [vmem:[#allocation5] sm:$0xff] }
  0x12   :  { %v135_v10 = vperm.slane %v76_v2, 6  ;;  %v385_v13 = vunpack.c.l.bf16 %v392_v12  ;;  %v386_v17 = vunpack.c.h.bf16 %v392_v12  ;;  %v381_v20 = vunpack.c.l.bf16 %v391_v15  ;;  %282 = vmatpush.bf16.msra.mxu0 %v374_v23  ;;  %v295_v46 = vld [vmem:[%s635_s5] sm:$0xff]  ;;  %v393_v52 = vld [vmem:[#allocation2 + $0x18] sm:$0xff]   ;;  %s547_s23 = smov [#allocation8]   ;;  %s337_s27 = sshll.u32 %s637_s7, 4  ;;  %s338_s27 = int_to_ptr.hbm [resolvable:$true] %s337_s27 }
  0x13   :  { %403 = vset.pattern.permute.xlu1 %v95_v1  ;;  %402 = vset.pattern.permute.xlu0 %v95_v1  ;;  %v377_v21 = vunpack.c.l.bf16 %v376_v16  ;;  %v382_v37 = vunpack.c.h.bf16 %v391_v15  ;;  %v378_v38 = vunpack.c.h.bf16 %v376_v16  ;;  %vm296_vm1 = vcmp.gt.f32.partialorder %v295_v46, 0.5  ;;  %s335_s24 = sshll.u32 %s547_s23, 4  ;;  %s548_s28 = smov [#allocation9]   ;;  %s336_s24 = int_to_ptr.vmem [resolvable:$true] %s335_s24 }
  0x14   :  { %404 = vset.pattern.permute.xlu2 %v95_v1  ;;  %v322_v53 = vsel %vm296_vm1, 1, %v546_v50  ;;  %v390_v62 = vunpack.c.h.bf16 %v393_v52  ;;  %v389_v63 = vunpack.c.l.bf16 %v393_v52  ;;  %vm246_vm2 = vcmask 1041409   ;;  %s346_s29 = sshll.u32 %s548_s28, 4  ;;  %s348_s10 = sshll.u32 %s638_s8, 4  ;;  %s347_s29 = int_to_ptr.vmem [resolvable:$true] %s346_s29  ;;  %s349_s10 = int_to_ptr.hbm [resolvable:$true] %s348_s10 }
  0x15   :  { %vm248_vm3 = vcmask 1042434   ;;  %vm250_vm4 = vcmask 1043459   ;;  %vm252_vm5 = vcmask 1044484   ;;  %vm254_vm6 = vcmask 1045509  }
  0x16   :  { %283 = vmatpush.bf16.msra.mxu0 %v373_v30  ;;  %vm256_vm7 = vcmask 1046534   ;;  %vm258_vm8 = vcmask 1047559  }
  0x1b   :  { %112 = vperm.xlu1 %403, %v107_v3   ;;  %98 = vperm.xlu0 %402, %v93_v4  }
  0x1c   :  { %126 = vperm.xlu2 %404, %v121_v5  }
  0x23   :  { %119 = vperm.xlu1 %403, %v114_v6   ;;  %105 = vperm.xlu0 %402, %v100_v7  }
  0x24   :  { %133 = vperm.xlu2 %404, %v128_v8  }
  0x2b   :  { %147 = vperm.xlu1 %403, %v142_v9   ;;  %140 = vperm.xlu0 %402, %v135_v10  }
  0x2c   :  { %405 = vset.pattern.permute.xlu2 %v546_v50 }
  0x2d   :  { %324 = vperm.xlu2 %405, %v322_v53  }
  0x33   :  { %406 = vset.pattern.permute.xlu0 %v546_v50 }
  0x76   :  { %v127_v11 = vpop.permute.xlu2 %126 }
  0x77   :  { %v153_v14 = vmul.f32 %v385_v13, %v127_v11 }
  0x79   :  { %v186_v19 = vsel %vm157_vm0, %v153_v14, 0.0 }
  0x7a   :  { %v187_v24 = vrot.slane %v186_v19, 4 }
  0x7c   :  { %v188_v33 = vadd.f32 %v187_v24, %v186_v19 }
  0x7e   :  { %v134_v18 = vpop.permute.xlu2 %133  ;;  %v189_v41 = vrot.slane %v188_v33, 2 }
  0x7f   :  { %v154_v22 = vmul.f32 %v386_v17, %v134_v18 }
  0x80   :  { %v190_v57 = vadd.f32 %v189_v41, %v188_v33 }
  0x81   :  { %v193_v29 = vsel %vm157_vm0, %v154_v22, 0.0 }
  0x82   :  { %v194_v36 = vrot.slane %v193_v29, 4  ;;  %v191_v3 = vrot.slane %v190_v57, 1 }
  0x84   :  { %v195_v47 = vadd.f32 %v194_v36, %v193_v29 }
  0x86   :  { %v196_v61 = vrot.slane %v195_v47, 2 }
  0x88   :  { %v197_v9 = vadd.f32 %v196_v61, %v195_v47 }
  0x8a   :  { %v198_v23 = vrot.slane %v197_v9, 1 }
  0x8d   :  { %v113_v25 = vpop.permute.xlu1 %112  ;;  %v99_v26 = vpop.permute.xlu0 %98 }
  0x8e   :  { %v151_v27 = vmul.f32 %v381_v20, %v113_v25  ;;  %v149_v28 = vmul.f32 %v377_v21, %v99_v26  ;;  %v192_v21 = vadd.f32 %v191_v3, %v190_v57 }
  0x90   :  { %v172_v31 = vsel %vm157_vm0, %v151_v27, 0.0  ;;  %v158_v32 = vsel %vm157_vm0, %v149_v28, 0.0  ;;  %v218_v33 = vpack.c.bf16 %v192_v21, %v192_v21 }
  0x91   :  { %v173_v34 = vrot.slane %v172_v31, 4  ;;  %v159_v35 = vrot.slane %v158_v32, 4 }
  0x92   :  { %v242_v46 = vunpack.c.l.b16 %v218_v33 }
  0x93   :  { %v174_v39 = vadd.f32 %v173_v34, %v172_v31  ;;  %v160_v40 = vadd.f32 %v159_v35, %v158_v32  ;;  %v199_v34 = vadd.f32 %v198_v23, %v197_v9 }
  0x95   :  { %v175_v42 = vrot.slane %v174_v39, 2  ;;  %v161_v43 = vrot.slane %v160_v40, 2  ;;  %v120_v44 = vpop.permute.xlu1 %119  ;;  %v106_v45 = vpop.permute.xlu0 %105 }
  0x96   :  { %v152_v48 = vmul.f32 %v382_v37, %v120_v44  ;;  %v150_v49 = vmul.f32 %v378_v38, %v106_v45  ;;  %v219_v44 = vpack.c.bf16 %v199_v34, %v199_v34 }
  0x97   :  { %v162_v51 = vadd.f32 %v161_v43, %v160_v40  ;;  %v176_v54 = vadd.f32 %v175_v42, %v174_v39 }
  0x98   :  { %v179_v55 = vsel %vm157_vm0, %v152_v48, 0.0  ;;  %v165_v56 = vsel %vm157_vm0, %v150_v49, 0.0  ;;  %v243_v53 = vunpack.c.l.b16 %v219_v44 }
  0x99   :  { %v180_v58 = vrot.slane %v179_v55, 4  ;;  %v166_v59 = vrot.slane %v165_v56, 4  ;;  %v163_v60 = vrot.slane %v162_v51, 1  ;;  %v177_v2 = vrot.slane %v176_v54, 1 }
  0x9b   :  { %v181_v0 = vadd.f32 %v180_v58, %v179_v55  ;;  %v167_v1 = vadd.f32 %v166_v59, %v165_v56  ;;  %v164_v8 = vadd.f32 %v163_v60, %v162_v51  ;;  %v178_v14 = vadd.f32 %v177_v2, %v176_v54  ;;  %v407_v60 = vld [vmem:[%s633_s3] ss:$0 sm:$0xff] }
  0x9d   :  { %v182_v4 = vrot.slane %v181_v0, 2  ;;  %v168_v5 = vrot.slane %v167_v1, 2  ;;  %v148_v6 = vpop.permute.xlu1 %147  ;;  %v141_v7 = vpop.permute.xlu0 %140  ;;  %v214_v22 = vpack.c.bf16 %v164_v8, %v164_v8  ;;  %v216_v28 = vpack.c.bf16 %v178_v14, %v178_v14  ;;  %v408_v14 = vld [vmem:[%s636_s6] ss:$0 sm:$0xff] }
  0x9e   :  { %v156_v10 = vmul.f32 %v390_v62, %v148_v6  ;;  %v155_v11 = vmul.f32 %v389_v63, %v141_v7  ;;  %v299_v6 = vld [vmem:[#allocation7] sm:$0xff] }
  0x9f   :  { %v183_v12 = vadd.f32 %v182_v4, %v181_v0  ;;  %v169_v13 = vadd.f32 %v168_v5, %v167_v1  ;;  %v238_v35 = vunpack.c.l.b16 %v214_v22  ;;  %v240_v39 = vunpack.c.l.b16 %v216_v28 }
  0xa0   :  { %v207_v15 = vsel %vm157_vm0, %v156_v10, 0.0  ;;  %v200_v16 = vsel %vm157_vm0, %v155_v11, 0.0 }
  0xa1   :  { %v184_v17 = vrot.slane %v183_v12, 1  ;;  %v170_v18 = vrot.slane %v169_v13, 1  ;;  %v208_v19 = vrot.slane %v207_v15, 4  ;;  %v201_v20 = vrot.slane %v200_v16, 4 }
  0xa3   :  { %v185_v24 = vadd.f32 %v184_v17, %v183_v12  ;;  %v171_v25 = vadd.f32 %v170_v18, %v169_v13  ;;  %v209_v26 = vadd.f32 %v208_v19, %v207_v15  ;;  %v202_v27 = vadd.f32 %v201_v20, %v200_v16  ;;  %v325_v15 = vpop.permute.xlu2 %324 }
  0xa4   :  { %vm326_vm10 = vcmp.eq.s32.totalorder %v325_v15, 1 }
  0xa5   :  { %v217_v29 = vpack.c.bf16 %v185_v24, %v185_v24  ;;  %v215_v30 = vpack.c.bf16 %v171_v25, %v171_v25  ;;  %v210_v31 = vrot.slane %v209_v26, 2  ;;  %v203_v32 = vrot.slane %v202_v27, 2 }
  0xa7   :  { %v239_v36 = vunpack.c.l.b16 %v215_v30  ;;  %v211_v37 = vadd.f32 %v210_v31, %v209_v26  ;;  %v204_v38 = vadd.f32 %v203_v32, %v202_v27  ;;  %v241_v40 = vunpack.c.l.b16 %v217_v29 }
  0xa9   :  { %v247_v41 = vsel %vm246_vm2, %v239_v36, %v238_v35  ;;  %v212_v42 = vrot.slane %v211_v37, 1  ;;  %v205_v43 = vrot.slane %v204_v38, 1 }
  0xaa   :  { %v249_v45 = vsel %vm248_vm3, %v240_v39, %v247_v41 }
  0xab   :  { %v213_v47 = vadd.f32 %v212_v42, %v211_v37  ;;  %v206_v48 = vadd.f32 %v205_v43, %v204_v38  ;;  %v251_v49 = vsel %vm250_vm4, %v241_v40, %v249_v45 }
  0xac   :  { %v253_v52 = vsel %vm252_vm5, %v242_v46, %v251_v49 }
  0xad   :  { %v221_v50 = vpack.c.bf16 %v213_v47, %v213_v47  ;;  %v220_v51 = vpack.c.bf16 %v206_v48, %v206_v48  ;;  %v255_v56 = vsel %vm254_vm6, %v243_v53, %v253_v52 }
  0xaf   :  { %v245_v54 = vunpack.c.l.b16 %v221_v50  ;;  %v244_v55 = vunpack.c.l.b16 %v220_v51 }
  0xb1   :  { %v257_v57 = vsel %vm256_vm7, %v244_v55, %v255_v56 }
  0xb2   :  { %v259_v58 = vsel %vm258_vm8, %v245_v54, %v257_v57 }
  0xb3   :  { %v260_v59 = vpack.c.b16 %v259_v58, %v259_v58 }
  0xb5   :  { %372 = vmatmul.msk.bf16.vlgmr.msra.gmra.mxu0 %vm157_vm0, %v260_v59 }
 0x132   :  { %v285_v61 = vpop.f32.mrf.mxu0 }
 0x133   :  { %v286_v62 = vadd.f32 %v407_v60, %v285_v61 }
 0x135   :  { %v303_v63 = vand.u32 2147483647, %v286_v62  ;;  %289 = vst [vmem:[#allocation8] sm:$0xff] %v286_v62  ;;  %v300_v8 = vmax.f32 %v286_v62, 0.0  ;;  %v301_v9 = vmul.f32 %v299_v6, %v286_v62 }
 0x136   :  { %340 = dma.vmem_to_hbm [thread:$0]  %s336_s24, 128, %s338_s27, [#allocation4]  }
 0x137   :  { %v304_v0 = vsub.f32 0.0, %v303_v63  ;;  %v302_v16 = vsub.f32 %v300_v8, %v301_v9 }
 0x139   :  { %v305_v1 = vmul.f32 1.442695, %v304_v0 }
 0x13a   :  { %v287_v2 = vpop.f32.mrf.mxu0 }
 0x13b   :  { %409 = vpow2.f32 %v305_v1 }
 0x141   :  { %v410_v3 = vpop.eup %409 }
 0x142   :  { %v307_v4 = vadd.f32 1.0, %v410_v3  ;;  %v310_v5 = vmul.f32 -0.5, %v410_v3  ;;  %v313_v10 = vand.u32 2147483647, %v410_v3 }
 0x144   :  { %411 = vlog2.f32 %v307_v4  ;;  %v311_v7 = vadd.f32 1.0, %v310_v5  ;;  %vm314_vm9 = vcmp.lt.f32.partialorder %v313_v10, 0.0004427343 }
 0x146   :  { %v312_v13 = vmul.f32 %v410_v3, %v311_v7 }
 0x14a   :  { %v412_v11 = vpop.eup %411 }
 0x14b   :  { %v309_v12 = vmul.f32 0.6931472, %v412_v11 }
 0x14d   :  { %v315_v17 = vsel %vm314_vm9, %v312_v13, %v309_v12 }
 0x14e   :  { %v316_v18 = vadd.f32 %v315_v17, %v302_v16 }
 0x150   :  { %v321_v19 = vmul.f32 %v408_v14, %v316_v18 }
 0x152   :  { %v327_v20 = vsel %vm326_vm10, %v321_v19, 0.0 }
 0x153   :  { %329 = vst [vmem:[#allocation9] sm:$0xff] %v327_v20 }
 0x154   :  { %351 = dma.vmem_to_hbm [thread:$0]  %s347_s29, 128, %s349_s10, [#allocation10]  }
 0x155   :  { %537 = dma.done.wait [#allocation4], 128  }
 0x156   :  { %538 = vsyncadd [#allocation4], 4294967168 }
 0x157   :  { %539 = dma.done.wait [#allocation10], 128  }
 0x158   :  { %540 = vsyncadd [#allocation10], 4294967168 }
 0x159   :  { %360 = vsyncpa [#allocation3], 1 }
 0x15a   :  { %361 = vsyncpa [#allocation6], 1 }
 0x15b   :  { %362 = vsyncpa [#allocation4], 1 }
 0x15c   :  { %363 = vsyncpa [#allocation10], 1 }

</bundles_post_ra>
